<compile_context>
chip_gen: v6e
topology: v6e:2x2x1
jax: 0.10.0
libtpu: 0.0.40
codegen_flags: <defaults>
</compile_context>

<pallas_src>
import functools

import jax
import jax.numpy as jnp
from jax.experimental import pallas as pl
from jax.experimental.pallas import tpu as pltpu


# ---------------------------------------------------------------------------
# Pass 1: per-tile  Σ_hw x  (C_in,1)  and  Gram  Σ_hw x·xᵀ  (C_in,C_in)
# ---------------------------------------------------------------------------
def _stats_kernel(x_ref, stat_ref, *, n_total, hw_total, n_inner):
    # x_ref: (BN, C_in, T); stat_ref: (1, 1, C_in, C_in + 1) resident accumulator
    bn, c_in, t = x_ref.shape
    bi = pl.program_id(0)
    ti = pl.program_id(1) * n_inner + pl.program_id(2)   # global hw-tile index

    # Zero the accumulator at the first inner hw tile (reduction axis is the
    # last grid axis -> output block is resident across it).
    @pl.when(pl.program_id(2) == 0)
    def _init():
        stat_ref[...] = jnp.zeros_like(stat_ref)

    # Lane mask handles the (possibly) partial last hw tile and any fully-OOB
    # tiles from the hw outer/inner split.  The per-element select on x is
    # O(C_in*T) next to the O(C_in^2*T) matmul and HBM streaming — noise.
    lane = ti * t + jax.lax.broadcasted_iota(jnp.int32, (1, t), 1)
    lane_ok = lane < hw_total                               # (1, T)

    def body(i, carry):
        s_acc, g_acc = carry
        row_ok = (bi * bn + i) < n_total                    # padded batch rows
        xm = jnp.where(jnp.logical_and(row_ok, lane_ok), x_ref[i], 0)
        s_acc = s_acc + jnp.sum(xm.astype(jnp.float32), axis=1, keepdims=True)
        # Gram: long-K (K = T lanes) contraction on the MXU, f32 accumulation.
        g_acc = g_acc + jax.lax.dot_general(
            xm, xm, (((1,), (1,)), ((), ())),
            preferred_element_type=jnp.float32)
        return s_acc, g_acc

    s0 = jnp.zeros((c_in, 1), jnp.float32)
    g0 = jnp.zeros((c_in, c_in), jnp.float32)
    s_acc, g_acc = jax.lax.fori_loop(0, bn, body, (s0, g0), unroll=True)

    stat_ref[...] += jnp.concatenate([s_acc, g_acc], axis=1)[None, None, :, :]


# ---------------------------------------------------------------------------
# Pass 2: z = W_eff @ x (BN scale pre-folded into W rows), add per-channel shift
# ---------------------------------------------------------------------------
def _apply_kernel(x_ref, w_ref, shift_ref, o_ref):
    # x_ref: (BN, C_in, T); w_ref: (C_out, C_in); shift: (C_out, 1); o: (BN, C_out, T)
    bn = x_ref.shape[0]
    w = w_ref[...]           # hoisted out of the batch loop
    shift = shift_ref[...]   # (C_out, 1), broadcast over lanes in the add

    def body(i, carry):
        z = jnp.dot(w, x_ref[i], preferred_element_type=jnp.float32)
        o_ref[i] = (z + shift).astype(o_ref.dtype)
        return carry

    jax.lax.fori_loop(0, bn, body, 0, unroll=True)


# ---------------------------------------------------------------------------
# Per-generation VMEM config + VMEM-aware tile selection
# ---------------------------------------------------------------------------
def _vmem_config():
    """Returns (vmem_limit_bytes, live-VMEM budget, target HBM bytes / grid step)."""
    try:
        cap = pltpu.get_tpu_info().vmem_capacity_bytes
    except Exception:
        cap = 64 * 1024 * 1024            # be conservative (v7x-sized) if query fails
    if cap >= 128 * 1024 * 1024:          # v5e / v6e: plenty of headroom
        return 64 << 20, 40 << 20, 4 << 20
    return 44 << 20, 24 << 20, 2 << 20    # v7x: 64 MiB physical — don't over-ask


def _choose_tiles(n, c_in, c_out, hw, in_b, out_b, *, budget, target):
    """Pick (batch tile, hw/lane tile) so both passes fit the VMEM budget."""
    acc_bytes = 2 * c_in * (c_in + 1) * 4            # pass-1 stats accumulator

    def live(bn_, t_):
        p1 = 2 * bn_ * c_in * t_ * in_b + acc_bytes
        p2 = (2 * bn_ * t_ * (c_in * in_b + c_out * out_b)
              + 2 * c_out * c_in * in_b)
        return max(p1, p2)

    # Lane tile: full hw if small, otherwise a multiple of 128, shrunk until a
    # bn=1 step fits the budget.
    t = min(hw, 4096)
    while t > 512 and live(1, t) > budget:
        t = max(512, (t // 2) // 128 * 128)

    # Batch tile: aim for ~target HBM bytes per grid step (amortizes the
    # ~0.35 us per-step overhead); cap at 4 so the unrolled fori_loop stays small.
    per_step = max(1, t * (c_in * in_b + c_out * out_b))
    bn = max(1, min(n, 4, target // per_step))
    while bn > 1 and live(bn, t) > budget:
        bn -= 1
    return int(bn), int(t)


# ---------------------------------------------------------------------------
# Module wrapper
# ---------------------------------------------------------------------------
def resample_channels_forward(x_nchw, w, b, gamma, beta, *, eps=1e-5,
                              compute_dtype=None, out_dtype=None,
                              bn=None, t_hw=None):
    """Forward of Conv2d(kernel=1, stride=1) + BatchNorm2d (training-mode stats).

    x_nchw: (N, C_in, H, W); w: (C_out, C_in) or (C_out, C_in, 1, 1);
    b, gamma, beta: (C_out,).
    compute_dtype: streaming / matmul dtype (default: x.dtype).  Pass
      jnp.bfloat16 to halve HBM read bytes; accumulation is always f32.
    The conv bias `b` is accepted for interface parity but is mathematically
    dead: BatchNorm's batch-mean subtraction cancels a per-channel bias.
    """
    if w.ndim == 4:           # accept PyTorch Conv2d weight layout (C_out, C_in, 1, 1)
        w = w.reshape(w.shape[0], w.shape[1])
    n, c_in, h, wd = x_nchw.shape
    c_out = w.shape[0]
    hw = h * wd

    cdt = jnp.dtype(compute_dtype) if compute_dtype is not None else x_nchw.dtype
    odt = jnp.dtype(out_dtype) if out_dtype is not None else x_nchw.dtype

    # NCHW -> (N, C_in, H*W): pure reshape, no transpose pass through HBM.
    x3 = x_nchw.reshape(n, c_in, hw).astype(cdt)
    # Keep output stores at full lane width: pad tiny feature maps up to 128.
    hw_p = hw
    if hw < 128:
        x3 = jnp.pad(x3, ((0, 0), (0, 0), (0, 128 - hw)))
        hw_p = 128

    vmem_limit, vmem_budget, target = _vmem_config()
    in_b = jnp.dtype(cdt).itemsize
    out_b = jnp.dtype(odt).itemsize
    bn_, t_ = _choose_tiles(n, c_in, c_out, hw_p, in_b, out_b,
                            budget=vmem_budget, target=target)
    if bn is not None:
        bn_ = int(bn)
    if t_hw is not None:
        t_ = int(t_hw)

    nb, nt = pl.cdiv(n, bn_), pl.cdiv(hw_p, t_)
    # Give pass 1 a second 'parallel' grid axis over hw when the batch axis has
    # a single block, so both TensorCores of a v7x stay busy during stats.
    n_outer = 2 if (nb == 1 and nt >= 2) else 1
    n_inner = pl.cdiv(nt, n_outer)

    # ---- Pass 1: per-channel Σx and Gram Σ x·xᵀ over (batch, H*W) -----------
    stats = pl.pallas_call(
        functools.partial(_stats_kernel, n_total=n, hw_total=hw, n_inner=n_inner),
        out_shape=jax.ShapeDtypeStruct((nb, n_outer, c_in, c_in + 1), jnp.float32),
        grid_spec=pltpu.PrefetchScalarGridSpec(
            num_scalar_prefetch=0,
            grid=(nb, n_outer, n_inner),
            in_specs=[
                pl.BlockSpec(
                    (bn_, c_in, t_),
                    # Clamp so over-split (oi, ii) combos never address an
                    # out-of-range block; their lanes are masked in-kernel.
                    lambda bi, oi, ii: (bi, 0,
                                        jnp.minimum(oi * n_inner + ii, nt - 1))),
            ],
            out_specs=pl.BlockSpec((1, 1, c_in, c_in + 1),
                                   lambda bi, oi, ii: (bi, oi, 0, 0)),
        ),
        compiler_params=pltpu.CompilerParams(
            dimension_semantics=("parallel", "parallel", "arbitrary"),
            vmem_limit_bytes=vmem_limit,
        ),
    )(x3)

    # ---- Fold-up: recover conv-output stats and the BN affine (tiny JAX) ----
    m = float(n * hw)
    tot = jnp.sum(stats, axis=(0, 1))                 # (C_in, C_in + 1)
    sum_x = tot[:, :1]                                # (C_in, 1)
    gram = tot[:, 1:]                                 # (C_in, C_in)
    w32 = w.astype(jnp.float32)
    sum_z = w32 @ sum_x                               # Σ z   per out-channel
    sumsq_z = jnp.sum((w32 @ gram) * w32, axis=1, keepdims=True)  # Σ z^2
    mean = sum_z / m
    # Biased variance, matching PyTorch's training-mode normalization path.
    var = jnp.maximum(sumsq_z / m - mean * mean, 0.0)
    # TODO(synk): for huge N*H*W or large channel means, use a shifted / Welford
    # style accumulation (subtract a pilot mean from x before the Gram) to avoid
    # E[z^2] - E[z]^2 cancellation in f32.
    inv = jax.lax.rsqrt(var + eps)
    g32 = gamma.astype(jnp.float32).reshape(c_out, 1)
    scale = g32 * inv                                  # (C_out, 1)
    shift = beta.astype(jnp.float32).reshape(c_out, 1) - mean * scale
    w_eff = (w32 * scale).astype(cdt)   # fold BN scale into the conv weight rows

    # ---- Pass 2: z = W_eff @ x, add shift, lane-dense NCHW output ------------
    out3 = pl.pallas_call(
        _apply_kernel,
        out_shape=jax.ShapeDtypeStruct((n, c_out, hw_p), odt),
        grid_spec=pltpu.PrefetchScalarGridSpec(
            num_scalar_prefetch=0,
            grid=(nb, nt),
            in_specs=[
                pl.BlockSpec((bn_, c_in, t_), lambda bi, ti: (bi, 0, ti)),
                pl.BlockSpec((c_out, c_in), lambda bi, ti: (0, 0)),
                pl.BlockSpec((c_out, 1), lambda bi, ti: (0, 0)),
            ],
            out_specs=pl.BlockSpec((bn_, c_out, t_), lambda bi, ti: (bi, 0, ti)),
        ),
        compiler_params=pltpu.CompilerParams(
            dimension_semantics=("parallel", "parallel"),
            vmem_limit_bytes=vmem_limit,
        ),
    )(x3, w_eff, shift)

    if hw_p != hw:
        out3 = out3[:, :, :hw]
    return out3.reshape(n, c_out, h, wd)


# ---------------------------------------------------------------------------
# Pure-JAX reference (same semantics, bias included) for verification
# ---------------------------------------------------------------------------
def reference_forward(x_nchw, w, b, gamma, beta, *, eps=1e-5):
    y = jnp.einsum("nchw,oc->nohw", x_nchw, w) + b[None, :, None, None]
    mean = jnp.mean(y, axis=(0, 2, 3), keepdims=True)
    var = jnp.mean((y - mean) ** 2, axis=(0, 2, 3), keepdims=True)
    yhat = (y - mean) * jax.lax.rsqrt(var + eps)
    return yhat * gamma[None, :, None, None] + beta[None, :, None, None]


if __name__ == "__main__":
    key = jax.random.PRNGKey(0)
    k_x, k_w, k_b = jax.random.split(key, 3)

    N, C_IN, C_OUT, H, W = 2, 4, 8, 16, 16

    x = jax.random.normal(k_x, (N, C_IN, H, W), dtype=jnp.float32)

    # Deterministic parameter init (Conv2d kaiming-uniform-like; BN defaults).
    bound = 1.0 / (C_IN ** 0.5)
    w = jax.random.uniform(k_w, (C_OUT, C_IN), jnp.float32, -bound, bound)
    b = jax.random.uniform(k_b, (C_OUT,), jnp.float32, -bound, bound)
    gamma = jnp.ones((C_OUT,), jnp.float32)
    beta = jnp.zeros((C_OUT,), jnp.float32)

    ref = reference_forward(x, w, b, gamma, beta)

    # f32 streaming path: exact parity with the f32 reference.
    out = jax.block_until_ready(resample_channels_forward(x, w, b, gamma, beta))
    assert out.shape == (N, C_OUT, H, W)
    assert jnp.allclose(out, ref, atol=1e-3, rtol=1e-3), "f32 path mismatch"

    # bf16 streaming path (half the HBM read bytes): looser tolerance.
    out_bf = jax.block_until_ready(
        resample_channels_forward(x, w, b, gamma, beta,
                                  compute_dtype=jnp.bfloat16))
    assert out_bf.shape == (N, C_OUT, H, W)
    assert jnp.allclose(out_bf, ref, atol=5e-2, rtol=5e-2), "bf16 path mismatch"

    print("KERNEL_OK")
</pallas_src>

<mosaic_0001>
module attributes {stable_mosaic.version = 11 : i64} {
  func.func @_stats_kernel(%arg0: i32, %arg1: i32, %arg2: i32, %arg3: memref<2x4x256xf32, #tpu.memory_space<vmem>>, %arg4: memref<1x1x4x5xf32, #tpu.memory_space<vmem>>) attributes {dimension_semantics = [#tpu.dimension_semantics<parallel>, #tpu.dimension_semantics<parallel>, #tpu.dimension_semantics<arbitrary>], iteration_bounds = array<i64: 1, 1, 1>, scalar_prefetch = 0 : i64, scratch_operands = 0 : i64, tpu.core_type = #tpu.core_type<tc>, window_params = [{transform_indices = @transform_0, window_bounds = array<i64: 2, 4, 256>}, {transform_indices = @transform_1, window_bounds = array<i64: 1, 1, 4, 5>}]} {
    %c1_i32 = arith.constant 1 : i32
    %0 = arith.muli %arg1, %c1_i32 : i32
    %1 = arith.addi %0, %arg2 : i32
    %c0_i32 = arith.constant 0 : i32
    %2 = arith.cmpi eq, %arg2, %c0_i32 : i32
    %3 = arith.extui %2 : i1 to i32
    %c0_i32_0 = arith.constant 0 : i32
    %4 = arith.cmpi ne, %3, %c0_i32_0 : i32
    scf.if %4 {
      %cst_26 = arith.constant 0.000000e+00 : f32
      %54 = vector.broadcast %cst_26 : f32 to vector<1x1x4x5xf32>
      %c0_27 = arith.constant 0 : index
      %c0_28 = arith.constant 0 : index
      %c0_29 = arith.constant 0 : index
      %c0_30 = arith.constant 0 : index
      %55 = vector.load %arg4[%c0_27, %c0_28, %c0_29, %c0_30] : memref<1x1x4x5xf32, #tpu.memory_space<vmem>>, vector<1x1x4x5xf32>
      tpu.vector_store %arg4[%c0_27, %c0_28, %c0_29, %c0_30], %54 {strides = array<i32>} : memref<1x1x4x5xf32, #tpu.memory_space<vmem>>, vector<1x1x4x5xf32>,
    } else {
    }
    %c256_i32 = arith.constant 256 : i32
    %5 = arith.muli %1, %c256_i32 : i32
    %6 = tpu.iota {dimensions = array<i32: 1>} : vector<1x256xi32>
    %7 = vector.broadcast %5 : i32 to vector<1x256xi32>
    %8 = arith.addi %7, %6 : vector<1x256xi32>
    %c256_i32_1 = arith.constant 256 : i32
    %9 = vector.broadcast %c256_i32_1 : i32 to vector<1x256xi32>
    %10 = arith.cmpi slt, %8, %9 : vector<1x256xi32>
    %cst = arith.constant 0.000000e+00 : f32
    %11 = vector.broadcast %cst : f32 to vector<4x1xf32>
    %cst_2 = arith.constant 0.000000e+00 : f32
    %12 = vector.broadcast %cst_2 : f32 to vector<4x4xf32>
    %c0_i32_3 = arith.constant 0 : i32
    %c2_i32 = arith.constant 2 : i32
    %13 = arith.muli %arg0, %c2_i32 : i32
    %14 = arith.addi %13, %c0_i32_3 : i32
    %c2_i32_4 = arith.constant 2 : i32
    %15 = arith.cmpi slt, %14, %c2_i32_4 : i32
    %16 = vector.broadcast %15 : i1 to vector<1x256xi1>
    %17 = arith.andi %16, %10 : vector<1x256xi1>
    %18 = arith.index_cast %c0_i32_3 : i32 to index
    %c0 = arith.constant 0 : index
    %c0_5 = arith.constant 0 : index
    %19 = vector.load %arg3[%18, %c0, %c0_5] : memref<2x4x256xf32, #tpu.memory_space<vmem>>, vector<1x4x256xf32>
    %20 = vector.shape_cast %19 : vector<1x4x256xf32> to vector<4x256xf32>
    %c0_i32_6 = arith.constant 0 : i32
    %21 = arith.sitofp %c0_i32_6 : i32 to f32
    %22 = vector.shape_cast %17 : vector<1x256xi1> to vector<1x256xi1>
    %23 = vector.broadcast %22 : vector<1x256xi1> to vector<4x256xi1>
    %24 = vector.broadcast %21 : f32 to vector<4x256xf32>
    %25 = arith.select %23, %20, %24 : vector<4x256xi1>, vector<4x256xf32>
    %cst_7 = arith.constant dense<0.000000e+00> : vector<4xf32>
    %26 = vector.multi_reduction <add>, %25, %cst_7 [1] : vector<4x256xf32> to vector<4xf32>
    %27 = vector.shape_cast %26 : vector<4xf32> to vector<4x1xf32>
    %28 = arith.addf %11, %27 : vector<4x1xf32>
    %cst_8 = arith.constant dense<0.000000e+00> : vector<4x4xf32>
    %29 = tpu.matmul %25, %25, %cst_8 {dimension_numbers = #tpu.dot_dimension_numbers<[1], [1], [0], [0], [0, 0, 1, 0], [], []>} : vector<4x256xf32>, vector<4x256xf32>, vector<4x4xf32> -> vector<4x4xf32>
    %30 = arith.addf %12, %29 : vector<4x4xf32>
    %c1_i32_9 = arith.constant 1 : i32
    %c2_i32_10 = arith.constant 2 : i32
    %31 = arith.muli %arg0, %c2_i32_10 : i32
    %32 = arith.addi %31, %c1_i32_9 : i32
    %c2_i32_11 = arith.constant 2 : i32
    %33 = arith.cmpi slt, %32, %c2_i32_11 : i32
    %34 = vector.broadcast %33 : i1 to vector<1x256xi1>
    %35 = arith.andi %34, %10 : vector<1x256xi1>
    %36 = arith.index_cast %c1_i32_9 : i32 to index
    %c0_12 = arith.constant 0 : index
    %c0_13 = arith.constant 0 : index
    %37 = vector.load %arg3[%36, %c0_12, %c0_13] : memref<2x4x256xf32, #tpu.memory_space<vmem>>, vector<1x4x256xf32>
    %38 = vector.shape_cast %37 : vector<1x4x256xf32> to vector<4x256xf32>
    %c0_i32_14 = arith.constant 0 : i32
    %39 = arith.sitofp %c0_i32_14 : i32 to f32
    %40 = vector.shape_cast %35 : vector<1x256xi1> to vector<1x256xi1>
    %41 = vector.broadcast %40 : vector<1x256xi1> to vector<4x256xi1>
    %42 = vector.broadcast %39 : f32 to vector<4x256xf32>
    %43 = arith.select %41, %38, %42 : vector<4x256xi1>, vector<4x256xf32>
    %cst_15 = arith.constant dense<0.000000e+00> : vector<4xf32>
    %44 = vector.multi_reduction <add>, %43, %cst_15 [1] : vector<4x256xf32> to vector<4xf32>
    %45 = vector.shape_cast %44 : vector<4xf32> to vector<4x1xf32>
    %46 = arith.addf %28, %45 : vector<4x1xf32>
    %cst_16 = arith.constant dense<0.000000e+00> : vector<4x4xf32>
    %47 = tpu.matmul %43, %43, %cst_16 {dimension_numbers = #tpu.dot_dimension_numbers<[1], [1], [0], [0], [0, 0, 1, 0], [], []>} : vector<4x256xf32>, vector<4x256xf32>, vector<4x4xf32> -> vector<4x4xf32>
    %48 = arith.addf %30, %47 : vector<4x4xf32>
    %c2_i32_17 = arith.constant 2 : i32
    %c0_18 = arith.constant 0 : index
    %c0_19 = arith.constant 0 : index
    %c0_20 = arith.constant 0 : index
    %c0_21 = arith.constant 0 : index
    %49 = vector.load %arg4[%c0_18, %c0_19, %c0_20, %c0_21] : memref<1x1x4x5xf32, #tpu.memory_space<vmem>>, vector<1x1x4x5xf32>
    %50 = tpu.concatenate %46, %48 in 1 : vector<4x1xf32>, vector<4x4xf32> -> vector<4x5xf32>
    %51 = vector.shape_cast %50 : vector<4x5xf32> to vector<1x1x4x5xf32>
    %52 = arith.addf %49, %51 : vector<1x1x4x5xf32>
    %c0_22 = arith.constant 0 : index
    %c0_23 = arith.constant 0 : index
    %c0_24 = arith.constant 0 : index
    %c0_25 = arith.constant 0 : index
    %53 = vector.load %arg4[%c0_22, %c0_23, %c0_24, %c0_25] : memref<1x1x4x5xf32, #tpu.memory_space<vmem>>, vector<1x1x4x5xf32>
    tpu.vector_store %arg4[%c0_22, %c0_23, %c0_24, %c0_25], %52 {strides = array<i32>} : memref<1x1x4x5xf32, #tpu.memory_space<vmem>>, vector<1x1x4x5xf32>,
    return
  }
  func.func @transform_0(%arg0: i32, %arg1: i32, %arg2: i32) -> (i32, i32, i32) {
    %c1_i32 = arith.constant 1 : i32
    %0 = arith.muli %arg1, %c1_i32 : i32
    %1 = arith.addi %0, %arg2 : i32
    %c0_i32 = arith.constant 0 : i32
    %2 = arith.minsi %1, %c0_i32 : i32
    %c0_i32_0 = arith.constant 0 : i32
    %c0_i32_1 = arith.constant 0 : i32
    return %arg0, %c0_i32_0, %2 : i32, i32, i32
  }
  func.func @transform_1(%arg0: i32, %arg1: i32, %arg2: i32) -> (i32, i32, i32, i32) {
    %c0_i32 = arith.constant 0 : i32
    %c0_i32_0 = arith.constant 0 : i32
    %c0_i32_1 = arith.constant 0 : i32
    return %arg0, %arg1, %c0_i32, %c0_i32_0 : i32, i32, i32, i32
  }
}

</mosaic_0001>

<bundles_post_ra>
// kernel: tpu_custom_call.1
= control target key start
LH: loop header
LB: loop body
LE: loop exit
PB: predicated region body
PF: predicated region fallthrough
CT: control target
= control target key end

     0   :  { %6 = vsyncpa [#allocation3], 0  ;;  %s340_s0 = inlined_call_operand.hbm [shape: f32[2,4,256], index: 0, kind: input, shape index: {}]   ;;  %s341_s1 = inlined_call_operand.hbm [shape: f32[1,1,4,5], index: 1, kind: output, shape index: {}]  }
   0x1   :  { %7 = vsyncpa [#allocation4], 0  ;;  %s316_s6 = smov [#allocation2]  }
   0x2   :  { %s19_s7 = sshll.u32 %s316_s6, 4  ;;  %s20_s7 = int_to_ptr.vmem [resolvable:$true] %s19_s7 }
   0x3   :  { %s280_s8 = scalar_lea.vmem %s20_s7, 256  ;;  %p285_p1 = scmp.lt.s32.totalorder %s20_s7, %s20_s7 }
   0x4   :  { %p281_p0 = scmp.ne.s32.totalorder %s20_s7, %s280_s8  ;;  %p286_p2 = scmp.lt.s32.totalorder %s280_s8, %s280_s8 }
   0x6   :  { %p287_p3 = por %p286_p2, %p285_p1 }
   0x8   :  { %p288_p4 = pnand %p287_p3, %p281_p0 }
   0xa   :  { %291 = shalt.err (!%p288_p4)
}
   0xb   :  { %s317_s9 = smov 128   ;;  %s318_s10 = smov 8  }
   0xc   :  { %25 = dma.hbm_to_vmem [thread:$0]  %s340_s0, 256, %s20_s7, [#allocation3], %s317_s9, %s317_s9, %s318_s10  }
   0xd   :  { %312 = dma.done.wait [#allocation3], 256  }
   0xe   :  { %313 = vsyncadd [#allocation3], 4294967040  ;;  %vm38_vm0 = vcmask 35840   ;;  %v319_v0 = vmov 0.0   ;;  %vm66_vm1 = vcmask 1043456   ;;  %v81_v1 = vld [vmem:[#allocation2 + $0x8] sm:$0xff] }
   0xf   :  { %39 = vst.msk [vmem:[#allocation5] sm:$0xf] %vm38_vm0, %v319_v0  ;;  %v56_v2 = vld [vmem:[#allocation2] sm:$0xff]  ;;  %v87_v3 = vcombine.high %v81_v1, %v81_v1  ;;  %v91_v7 = vsel %vm66_vm1, %v81_v1, 0.0  ;;  %s320_s0 = smov 1   ;;  %vm242_vm2 = vcmask 7168  }
  0x10   :  { %v62_v4 = vcombine.high %v56_v2, %v56_v2  ;;  %v67_v5 = vsel %vm66_vm1, %v56_v2, 0.0  ;;  %s321_s13 = smov [#allocation5]  }
  0x11   :  { %127 = vmatprep.subr.mxu0 %v87_v3  ;;  %v92_v8 = vsel %vm66_vm1, %v87_v3, 0.0  ;;  %161 = vmatprep.mubr.f32.mxu0 %v87_v3  ;;  %s253_s14 = sshll.u32 %s321_s13, 4  ;;  %s254_s14 = int_to_ptr.vmem [resolvable:$true] %s253_s14 }
  0x12   :  { %197 = vmatprep.subr.mxu1 %v62_v4  ;;  %v68_v6 = vsel %vm66_vm1, %v62_v4, 0.0  ;;  %128 = vmatpush1.xpose.msra.mxu0 %v81_v1  ;;  %v93_v10 = vadd.f32 %v92_v8, %v91_v7  ;;  %s292_s15 = scalar_lea.vmem %s254_s14, 64  ;;  %p297_p6 = scmp.lt.s32.totalorder %s254_s14, %s254_s14 }
  0x13   :  { %198 = vmatpush1.xpose.msra.mxu1 %v56_v2  ;;  %v69_v9 = vadd.f32 %v68_v6, %v67_v5  ;;  %231 = vmatprep.mubr.f32.mxu1 %v62_v4  ;;  %p293_p5 = scmp.ne.s32.totalorder %s254_s14, %s292_s15  ;;  %p298_p7 = scmp.lt.s32.totalorder %s292_s15, %s292_s15 }
  0x15   :  { %70 = vadd.xlane.f32.xlu0 %v69_v9  ;;  %162 = vmatmul.mubr.f32.vlgmr.msra.gmra.mxu0 %v81_v1  ;;  %p299_p8 = por %p298_p7, %p297_p6 }
  0x16   :  { %232 = vmatmul.mubr.f32.vlgmr.msra.gmra.mxu1 %v56_v2  ;;  %v237_v19 = vld [vmem:[#allocation5] sm:$0xf] }
  0x17   :  { %p300_p9 = pnand %p299_p8, %p293_p5 }
  0x19   :  { %94 = vadd.xlane.f32.xlu0 %v93_v10 }
  0x9e   :  { %v71_v16 = vpop.xlane.xlu0 %70 }
  0xa2   :  { %v95_v17 = vpop.xlane.xlu0 %94 }
  0xa3   :  { %v96_v18 = vadd.f32 %v95_v17, %v71_v16 }
  0xd5   :  { %v163_v11 = vpop.f32.mrf.mxu0 }
  0xd6   :  { %v233_v12 = vpop.f32.mrf.mxu1 }
  0xd7   :  { %v234_v13 = vadd.f32 %v233_v12, %v163_v11  ;;  %v165_v14 = vpop.f32.mrf.mxu0 }
  0xd8   :  { %v235_v15 = vpop.f32.mrf.mxu1 }
  0xd9   :  { %239 = vrot.lane.b32.xlu1 %v234_v13, %s320_s0 }
 0x14b   :  { %v240_v20 = vpop.permute.xlu1 %239 }
 0x14c   :  { %v243_v21 = vsel %vm242_vm2, %v96_v18, %v240_v20 }
 0x14d   :  { %v244_v22 = vadd.f32 %v243_v21, %v237_v19 }
 0x14f   :  { %246 = vst.msk [vmem:[#allocation5] sm:$0xf] %vm38_vm0, %v244_v22 }
 0x150   :  { %303 = shalt.err (!%p300_p9)
}
 0x151   :  { %256 = dma.vmem_to_hbm [thread:$0]  %s254_s14, 64, %s341_s1, [#allocation4]  }
 0x152   :  { %314 = dma.done.wait [#allocation4], 64  }
 0x153   :  { %315 = vsyncadd [#allocation4], 4294967232 }
 0x154   :  { %260 = vsyncpa [#allocation3], 1 }
 0x155   :  { %261 = vsyncpa [#allocation4], 1 }

</bundles_post_ra>
